<compile_context>
chip_gen: v7x
topology: tpu7x:2x2x1
jax: 0.10.0
libtpu: 0.0.40
codegen_flags: <defaults>
</compile_context>

<pallas_src>
import math

import numpy as np
import jax
import jax.numpy as jnp
from jax.experimental import pallas as pl
from jax.experimental.pallas import tpu as pltpu


# ----------------------------------------------------------------------------
# Identity (DFABackend.forward): zero-cost custom_vjp, no kernel, no HBM traffic.
# ----------------------------------------------------------------------------
@jax.custom_vjp
def dfa_identity(x):
    return x


def _dfa_identity_fwd(x):
    return x, None


def _dfa_identity_bwd(_, grad_output):
    # DFABackend.backward returns grad_output unchanged on the output path.
    # TODO(synk): the per-feedback-point injection (feedback_point.backward())
    # is torch-autograd plumbing with Python side effects; it is exposed here
    # as the explicit DFAManager.backward() method instead.
    return (grad_output,)


dfa_identity.defvjp(_dfa_identity_fwd, _dfa_identity_bwd)


# ----------------------------------------------------------------------------
# Pallas kernel: DFA random projection  (grad_2d @ projection)  on the MXU.
# ----------------------------------------------------------------------------
def _rp_matmul_kernel(g_ref, p_ref, o_ref):
    # (M, K) x (K, tile_n) -> (M, tile_n), f32 accumulation on the MXU.
    o_ref[...] = jnp.dot(g_ref[...], p_ref[...],
                         preferred_element_type=jnp.float32)


def dfa_random_projection(grad_2d, projection, *, tile_n=256,
                          compute_dtype=jnp.bfloat16):
    """Compute grad_2d @ projection with a Pallas MXU kernel.

    grad_2d:    (M, K)  — reshaped grad_output, K = d_output (small).
    projection: (K, N)  — fixed random matrix, N = max_d_feedback (large).
    Returns (M, N) float32.
    """
    M, K = grad_2d.shape
    Kp, N = projection.shape
    if K != Kp:
        raise ValueError(f"Inner-dim mismatch: {K} vs {Kp}")

    g = grad_2d.astype(compute_dtype)
    p = projection.astype(compute_dtype)

    # 256-aligned N tiles (v6e/v7x MXU); fall back to a single full-extent
    # block when N is small (full-dim blocks are exempt from the (8,128) rule).
    tn = tile_n if N > tile_n else N
    n_blocks = -(-N // tn)
    n_pad = n_blocks * tn
    if n_pad != N:
        p = jnp.pad(p, ((0, 0), (0, n_pad - N)))

    itemsize = jnp.dtype(compute_dtype).itemsize
    bytes_accessed = (M * K + K * n_pad) * itemsize + M * n_pad * 4

    out = pl.pallas_call(
        _rp_matmul_kernel,
        out_shape=jax.ShapeDtypeStruct((M, n_pad), jnp.float32),
        grid_spec=pltpu.PrefetchScalarGridSpec(
            num_scalar_prefetch=0,
            grid=(n_blocks,),
            in_specs=[
                # grad tile: constant block index -> resident in VMEM across grid
                pl.BlockSpec((M, K), lambda j: (0, 0)),
                # projection: walk the N dimension in 256-lane tiles
                pl.BlockSpec((K, tn), lambda j: (0, j)),
            ],
            out_specs=pl.BlockSpec((M, tn), lambda j: (0, j)),
        ),
        compiler_params=pltpu.CompilerParams(
            dimension_semantics=("parallel",)),   # shards N tiles across v7x's 2 TCs
        cost_estimate=pl.CostEstimate(
            flops=2 * M * K * n_pad, transcendentals=0,
            bytes_accessed=int(bytes_accessed)),
    )(g, p)

    return out if n_pad == N else out[:, :N]


# ----------------------------------------------------------------------------
# Python-side ports of the tinydfa bookkeeping classes.
# ----------------------------------------------------------------------------
def _remove_indices(shape, indices):
    idx = tuple(indices)
    return tuple(d for i, d in enumerate(shape) if i not in idx)


class RandomProjection:
    """Minimal port of tinydfa's RandomProjection: one fixed random matrix,
    applied with the Pallas MXU kernel."""

    def __init__(self, key=None):
        self._key = key if key is not None else jax.random.PRNGKey(0)
        self.projection = None

    def initialize(self, d_output, max_d_feedback, device=None):
        del device  # TODO(synk): torch device placement has no JAX equivalent here
        self.projection = jax.random.uniform(
            self._key, (d_output, max_d_feedback), dtype=jnp.float32,
            minval=-1.0, maxval=1.0)

    def __call__(self, grad_2d):
        return dfa_random_projection(grad_2d, self.projection)


class FeedbackLayer:
    """Feedback point recorder. Forward is the identity; allow_bp=False maps
    to stop_gradient (== input.detach() with requires_grad plumbing)."""

    def __init__(self, name=None, batch_dimensions=None, allow_bp=False,
                 record_feedback_point=True):
        self.name = name
        self.batch_dimensions = batch_dimensions
        self.allow_bp = allow_bp
        self._record_feedback_point = record_feedback_point
        self.feedback_point = None
        self.feedback = None

    @property
    def record_feedback_point(self):
        return self._record_feedback_point

    @record_feedback_point.setter
    def record_feedback_point(self, value):
        self._record_feedback_point = value
        if not value:
            self.feedback_point = None

    def __call__(self, x):
        # TODO(synk): PyTorch records only when input.requires_grad; JAX arrays
        # carry no grad flag, so we always record when enabled.
        if self.record_feedback_point:
            self.feedback_point = x
        if self.allow_bp:
            return x
        return jax.lax.stop_gradient(x)


class DFAManager:
    """JAX/Pallas port of tinydfa.dfa.DFAManager.

    __call__(output): one-time init bookkeeping, then DFABackend's identity
    (zero-cost custom_vjp — no data movement).
    backward(grad_output): explicit port of DFABackend.backward — Pallas MXU
    random projection + per-layer feedback slices.
    """

    def __init__(self, feedback_layers, rp_operation=None, normalization=None,
                 no_feedbacks=False, batch_dimensions=(0,)):
        self.feedback_layers = list(feedback_layers)
        self.rp = rp_operation if rp_operation is not None else RandomProjection()
        # TODO(synk): FeedbackNormalization.FAN_OUT is not defined in the spec;
        # normalization defaults to None (identity) here.
        self.normalization = normalization
        self.no_feedbacks = no_feedbacks
        self.batch_dimensions = batch_dimensions
        for layer in self.feedback_layers:
            if layer.batch_dimensions is None:
                layer.batch_dimensions = self.batch_dimensions
        self.max_d_feedback = 0
        self.d_output = None
        self.initialized = False
        self._allow_bp_all = False
        self._record_feedback_point_all = True
        self._use_bp = False

    def __call__(self, output):
        if not (self.initialized or self.no_feedbacks):
            self.d_output = int(math.prod(
                _remove_indices(output.shape, self.batch_dimensions)))
            for layer in self.feedback_layers:
                d_feedback = int(math.prod(_remove_indices(
                    layer.feedback_point.shape, layer.batch_dimensions)))
                if d_feedback > self.max_d_feedback:
                    self.max_d_feedback = d_feedback
            self.rp.initialize(self.d_output, self.max_d_feedback)
            self.initialized = True
        return dfa_identity(output)

    def backward(self, grad_output):
        """Explicit port of DFABackend.backward (the real DFA compute)."""
        if self.no_feedbacks:
            return grad_output
        d_grad = int(math.prod(
            _remove_indices(grad_output.shape, self.batch_dimensions)))
        if self.d_output != d_grad:
            raise RuntimeError(
                f"Mismatch between output dimension {self.d_output} and "
                f"gradient dimension {d_grad}!")
        random_projection = self.rp(grad_output.reshape(-1, d_grad))
        for layer in self.feedback_layers:
            if layer.record_feedback_point:
                feedback_point = layer.feedback_point
                feedback_shape = feedback_point.shape
                d_feedback = int(math.prod(
                    _remove_indices(feedback_shape, layer.batch_dimensions)))
                feedback = random_projection[:, :d_feedback].reshape(feedback_shape)
                if self.normalization is not None:
                    feedback = self.normalization(feedback, self, d_grad, d_feedback)
                # TODO(synk): feedback_point.backward(feedback) is torch-autograd
                # plumbing; the computed feedback is stored for the training loop
                # to apply instead.
                layer.feedback = feedback
                layer.feedback_point = None
        return grad_output

    @property
    def allow_bp_all(self):
        return self._allow_bp_all

    @allow_bp_all.setter
    def allow_bp_all(self, value):
        for layer in self.feedback_layers:
            layer.allow_bp = value
        self._allow_bp_all = value

    @property
    def record_feedback_point_all(self):
        return self._record_feedback_point_all

    @record_feedback_point_all.setter
    def record_feedback_point_all(self, value):
        for layer in self.feedback_layers:
            layer.record_feedback_point = value
        self._record_feedback_point_all = value

    @property
    def use_bp(self):
        return self._use_bp

    @use_bp.setter
    def use_bp(self, value):
        self.allow_bp_all = value
        self.no_feedbacks = value
        self.record_feedback_point_all = not value
        self._use_bp = value


if __name__ == "__main__":
    key = jax.random.PRNGKey(0)
    k1, k2, k3, k4 = jax.random.split(key, 4)

    # Conv-style hidden activation (NCHW) through a FeedbackLayer, then the
    # network output through the DFAManager.
    hidden = jax.random.normal(k1, (2, 4, 16, 16), dtype=jnp.float32)
    output = jax.random.normal(k2, (2, 32), dtype=jnp.float32)

    fb = FeedbackLayer(name="fb0", allow_bp=False)
    manager = DFAManager([fb])

    h = fb(hidden)                           # records feedback point, identity values
    y = jax.block_until_ready(manager(output))

    # Forward must be exactly the identity (zero data movement).
    assert y.shape == output.shape and y.dtype == output.dtype
    assert bool(jnp.all(y == output))
    assert bool(jnp.all(h == hidden))

    # Init bookkeeping matches the PyTorch module.
    assert manager.initialized
    assert manager.d_output == 32
    assert manager.max_d_feedback == 4 * 16 * 16
    assert manager.rp.projection.shape == (32, 4 * 16 * 16)

    # Gradient of the forward path is the straight-through identity
    # (DFABackend.backward returns grad_output unchanged).
    g = jax.grad(lambda o: jnp.sum(manager(o)))(output)
    assert bool(jnp.all(g == jnp.ones_like(output)))

    # Exercise the real DFA compute: Pallas MXU random-projection kernel.
    grad_output = jax.random.normal(k3, output.shape, dtype=jnp.float32)
    manager.backward(grad_output)
    feedback = jax.block_until_ready(fb.feedback)
    assert feedback.shape == hidden.shape and feedback.dtype == jnp.float32

    # Reference in numpy with the same bf16 operand rounding, f32 accumulation.
    g_np = np.asarray(grad_output.astype(jnp.bfloat16).astype(jnp.float32))
    p_np = np.asarray(manager.rp.projection.astype(jnp.bfloat16).astype(jnp.float32))
    ref = g_np.reshape(2, -1) @ p_np
    assert np.allclose(np.asarray(feedback).reshape(2, -1), ref,
                       rtol=1e-4, atol=1e-4)

    # Also exercise the padded-tail path (N not a multiple of the 256 tile).
    proj_tail = jax.random.uniform(k4, (32, 300), dtype=jnp.float32,
                                   minval=-1.0, maxval=1.0)
    out_tail = jax.block_until_ready(dfa_random_projection(grad_output, proj_tail))
    ref_tail = (np.asarray(grad_output.astype(jnp.bfloat16).astype(jnp.float32))
                @ np.asarray(proj_tail.astype(jnp.bfloat16).astype(jnp.float32)))
    assert out_tail.shape == (2, 300)
    assert np.allclose(np.asarray(out_tail), ref_tail, rtol=1e-4, atol=1e-4)

    print("KERNEL_OK")
</pallas_src>

<mosaic_0001>
module attributes {stable_mosaic.version = 11 : i64} {
  func.func @_rp_matmul_kernel(%arg0: i32, %arg1: memref<2x32xbf16, #tpu.memory_space<vmem>>, %arg2: memref<32x256xbf16, #tpu.memory_space<vmem>>, %arg3: memref<2x256xf32, #tpu.memory_space<vmem>>) attributes {dimension_semantics = [#tpu.dimension_semantics<parallel>], iteration_bounds = array<i64: 4>, scalar_prefetch = 0 : i64, scratch_operands = 0 : i64, tpu.core_type = #tpu.core_type<tc>, window_params = [{pipeline_mode = #tpu.pipeline_mode<synchronous>, transform_indices = @transform_0, window_bounds = array<i64: 2, 32>}, {transform_indices = @transform_1, window_bounds = array<i64: 32, 256>}, {transform_indices = @transform_2, window_bounds = array<i64: 2, 256>}]} {
    %c0 = arith.constant 0 : index
    %c0_0 = arith.constant 0 : index
    %0 = vector.load %arg1[%c0, %c0_0] : memref<2x32xbf16, #tpu.memory_space<vmem>>, vector<2x32xbf16>
    %c0_1 = arith.constant 0 : index
    %c0_2 = arith.constant 0 : index
    %1 = vector.load %arg2[%c0_1, %c0_2] : memref<32x256xbf16, #tpu.memory_space<vmem>>, vector<32x256xbf16>
    %cst = arith.constant dense<0.000000e+00> : vector<2x256xf32>
    %2 = tpu.matmul %0, %1, %cst {dimension_numbers = #tpu.dot_dimension_numbers<[1], [0], [0], [1], [0, 0, 1, 1], [], []>} : vector<2x32xbf16>, vector<32x256xbf16>, vector<2x256xf32> -> vector<2x256xf32>
    %c0_3 = arith.constant 0 : index
    %c0_4 = arith.constant 0 : index
    %3 = vector.load %arg3[%c0_3, %c0_4] : memref<2x256xf32, #tpu.memory_space<vmem>>, vector<2x256xf32>
    tpu.vector_store %arg3[%c0_3, %c0_4], %2 {strides = array<i32>} : memref<2x256xf32, #tpu.memory_space<vmem>>, vector<2x256xf32>,
    return
  }
  func.func @transform_0(%arg0: i32) -> (i32, i32) {
    %c0_i32 = arith.constant 0 : i32
    %c0_i32_0 = arith.constant 0 : i32
    %c0_i32_1 = arith.constant 0 : i32
    return %c0_i32, %c0_i32_0 : i32, i32
  }
  func.func @transform_1(%arg0: i32) -> (i32, i32) {
    %c0_i32 = arith.constant 0 : i32
    %c0_i32_0 = arith.constant 0 : i32
    return %c0_i32, %arg0 : i32, i32
  }
  func.func @transform_2(%arg0: i32) -> (i32, i32) {
    %c0_i32 = arith.constant 0 : i32
    %c0_i32_0 = arith.constant 0 : i32
    return %c0_i32, %arg0 : i32, i32
  }
}

</mosaic_0001>

<bundles_post_ra>
// kernel: tpu_custom_call.1
= control target key start
LH: loop header
LB: loop body
LE: loop exit
PB: predicated region body
PF: predicated region fallthrough
CT: control target
= control target key end

     0   :  { %7 = vsyncpa [#allocation3], 0  ;;  %s795_s0 = inlined_call_operand.hbm [shape: bf16[2,32], index: 0, kind: input, shape index: {}]   ;;  %s796_s1 = inlined_call_operand.hbm [shape: bf16[32,1024], index: 1, kind: input, shape index: {}]   ;;  %s797_s2 = inlined_call_operand.hbm [shape: f32[2,1024], index: 2, kind: output, shape index: {}]  }
   0x1   :  { %8 = vsyncpa [#allocation6], 0 }
   0x2   :  { %10 = vsyncpa [#allocation6 + $0x1], 0 }
   0x3   :  { %11 = vsyncpa [#allocation4], 0 }
   0x4   :  { %13 = vsyncpa [#allocation4 + $0x1], 0  ;;  %s600_s9 = smov 0   ;;  %s602_s10 = smov 0  }
   0x5   :  { %s604_s11 = smov 0   ;;  %s606_s12 = smov 0  }
   0x6 LB: > { %s621_s13 = sadd.s32 4294967295, %s576_s12   ;;  %s357_s14 = sadd.s32 4294967294, %s576_s12   ;;  %s576_s12 = sphi %s606_s12, %s820_s12   ;;  %s572_s11 = sphi %s604_s11, %s819_s11   ;;  %s568_s10 = sphi %s602_s10, %s818_s10   ;;  %s564_s9 = sphi %s600_s9, %s817_s9  }
   0x7   : > { %s625_s15 = sadd.s32 1, %s576_s12   ;;  %s47_s16 = sadd.s32 1, %s572_s11 }
   0x8   : > { %s44_s17 = ssub.s32 %s576_s12, %s625_s15  ;;  %p54_p0 = scmp.ne.s32.totalorder %s572_s11, %s568_s10 }
   0x9   : > { %p45_p1 = scmp.eq.s32.totalorder %s44_s17, 0  ;;  %p55_p2 = scmp.eq.s32.totalorder %s576_s12, 0 }
   0xa   : > { %p60_p3 = scmp.ne.s32.totalorder %s568_s10, %s564_s9  ;;  %p798_p4 = scmp.eq.s32.totalorder %s621_s13, 0 }
   0xb   : > { %s637_s18 = scalar_select %p45_p1, %s572_s11, %s47_s16  }
   0xc   : > { %p639_p5 = por %p55_p2, %p54_p0  ;;  %p645_p6 = por %p798_p4, %p60_p3 }
   0xd   : > { %p84_p7 = scmp.eq.s32.totalorder %s621_s13, 3  ;;  %p90_p8 = scmp.eq.s32.totalorder %s357_s14, 3 }
   0xe   : > { %s804_s20 = scalar_select %p645_p6, 1, 0 }
   0xf   : > { %p358_p9 = scmp.ge.s32.totalorder %s576_s12, 1  ;;  %p97_p10 = scmp.lt.s32.totalorder %s576_s12, 5 }
  0x10   : > { %p652_p11 = por %p84_p7, %p54_p0  ;;  %p656_p12 = por %p90_p8, %p60_p3 }
  0x11   : > { %p660_p13 = pnand %p358_p9, %p97_p10  ;;  %s578_s24 = smov [#allocation2]  }
  0x12   : > { %s805_s21 = scalar_select %p652_p11, 1, 0 }
  0x13   : > { %s806_s22 = scalar_select %p656_p12, 1, 0 }
  0x14   : > { %s807_s23 = scalar_select %p660_p13, 1, 0 }
  0x15   : > { %p389_p1 = pneg %p660_p13  ;;  %s110_s25 = sshll.u32 %s578_s24, 4  ;;  %s111_s25 = int_to_ptr.vmem [resolvable:$true] %s110_s25 }
  0x16   : > { %p402_p2 = scmp.lt.s32.totalorder %s576_s12, 4  ;;  %s121_s27 = sand.u32 1, %s572_s11  }
  0x17   : > { %p669_p0 = pnand %p389_p1, %p798_p4  ;;  %s361_s29 = sshll.u32 %s121_s27, 5 }
  0x18   : > { %p676_p3 = pnand %p402_p2, %p639_p5  ;;  %s448_s4 = scalar_lea.hbm %s795_s0, 16 }
  0x19   : > { %p449_p7 = scmp.ne.s32.totalorder %s795_s0, %s448_s4  ;;  %p450_p8 = pneg %p669_p0 }
  0x1a   : > { %s809_s28 = scalar_select %p676_p3, 1, 0 }
  0x1b   : > { %p451_p9 = pnand %p450_p8, %p449_p7  ;;  %p455_p5 = scmp.lt.u32.totalorder %s448_s4, %s795_s0 }
  0x1d   : > { %p452_p10 = pneg %p451_p9 }
  0x1f   : > { %p457_p1 = pnand %p455_p5, %p452_p10 }
  0x21   : > { %460 = shalt.err (!%p457_p1)
}
  0x22   : > { %s461_s14 = scalar_lea.vmem %s111_s25, 16  ;;  %s468_s16 = scalar_lea.vmem %s111_s25, 32 }
  0x23   : > { %p462_p2 = scmp.ne.s32.totalorder %s111_s25, %s461_s14  ;;  %p469_p11 = scmp.lt.s32.totalorder %s111_s25, %s111_s25 }
  0x24   : > { %p470_p6 = scmp.lt.s32.totalorder %s468_s16, %s461_s14 }
  0x25   : > { %p464_p4 = pnand %p462_p2, %p450_p8 }
  0x26   : > { %p471_p13 = por %p470_p6, %p469_p11 }
  0x27   : > { %p465_p12 = pneg %p464_p4 }
  0x29   : > { %p472_p3 = pnand %p471_p13, %p465_p12 }
  0x2b   : > { %475 = shalt.err (!%p472_p3)
}
  0x2c   : > { %392 = dma.hbm_to_vmem [thread:$0]  (!%p669_p0), %s795_s0, 16, %s111_s25, [#allocation3]  }
  0x2d   : > { %s379_s24 = sshll.u32 %s576_s12, 7  ;;  %s125_s30 = scalar_lea.vmem [#allocation5], %s361_s29 }
  0x2e   : > { %s132_s3 = sshll.u32 %s125_s30, 4  ;;  %s700_s6 = scalar_lea.hbm %s796_s1, %s379_s24  ;;  %s702_s3 = int_to_ptr.vmem [resolvable:$true] %s132_s3 }
  0x2f   : > { %s704_s26 = scalar_lea.sflag [#allocation6], %s121_s27  ;;  %s476_s7 = scalar_lea.hbm %s700_s6, 512 }
  0x30   : > { %p477_p4 = scmp.ne.s32.totalorder %s700_s6, %s476_s7  ;;  %p810_p6 = scmp.ne.s32.totalorder %s809_s28, 0 }
  0x31   : > { %s481_s8 = scalar_lea.hbm %s796_s1, 2048  ;;  %p482_p0 = scmp.lt.u32.totalorder %s700_s6, %s796_s1 }
  0x32   : > { %p478_p11 = pneg %p810_p6  ;;  %p483_p3 = scmp.lt.u32.totalorder %s481_s8, %s476_s7 }
  0x33   : > { %p485_p8 = scmp.lt.u32.totalorder %s476_s7, %s700_s6 }
  0x34   : > { %p479_p12 = pnand %p478_p11, %p477_p4  ;;  %p484_p7 = por %p483_p3, %p482_p0 }
  0x36   : > { %p480_p13 = pneg %p479_p12  ;;  %p486_p9 = por %p485_p8, %p484_p7 }
  0x38   : > { %p487_p10 = pnand %p486_p9, %p480_p13 }
  0x3a   : > { %490 = shalt.err (!%p487_p10)
}
  0x3b   : > { %s491_s27 = scalar_lea.vmem %s702_s3, 512  ;;  %s579_s17 = smov [#allocation5]  }
  0x3c   : > { %p492_p5 = scmp.ne.s32.totalorder %s702_s3, %s491_s27  ;;  %s496_s19 = sshll.u32 %s579_s17, 4  ;;  %s497_s19 = int_to_ptr.vmem [resolvable:$false] %s496_s19 }
  0x3d   : > { %s498_s24 = scalar_lea.vmem %s497_s19, 1024  ;;  %p499_p4 = scmp.lt.s32.totalorder %s702_s3, %s497_s19 }
  0x3e   : > { %p494_p1 = pnand %p492_p5, %p478_p11  ;;  %p500_p12 = scmp.lt.s32.totalorder %s498_s24, %s491_s27 }
  0x40   : > { %p495_p2 = pneg %p494_p1  ;;  %p501_p0 = por %p500_p12, %p499_p4 }
  0x42   : > { %p502_p3 = pnand %p501_p0, %p495_p2 }
  0x44   : > { %505 = shalt.err (!%p502_p3)
}
  0x45   : > { %s580_s30 = smov 512   ;;  %s581_s4 = smov 128  }
  0x46   : > { %s582_s5 = smov 8   ;;  %p811_p11 = scmp.ne.s32.totalorder %s807_s23, 0 }
  0x47   : > { %396 = dma.hbm_to_vmem [thread:$0]  (!%p810_p6), %s700_s6, 512, %s702_s3, %s704_s26, %s580_s30, %s581_s4, %s582_s5  }
  0x48   : > { %144 = sbr.rel (%p811_p11) target bundleno = 322 (0x142), region = 28  ;;  %p812_p13 = scmp.eq.s32.totalorder (!%p811_p11), %s621_s13, 0 }
  0x4f   : > { %551 = dma.done.wait (%p812_p13), [#allocation3], 16   ;;  %p813_p7 = pmov %p812_p13 }
  0x50   : > { %s739_s7 = sand.u32 1, %s568_s10   ;;  %p814_p8 = scmp.ne.s32.totalorder %s804_s20, 0 }
  0x51   : > { %553 = vsyncadd (%p813_p7), [#allocation3], 4294967280  ;;  %s366_s25 = sshll.u32 %s739_s7, 5  ;;  %s151_s29 = scalar_lea.sflag [#allocation6], %s739_s7 }
  0x52   : > { %s154_s8 = scalar_lea.vmem [#allocation5], %s366_s25 }
  0x53   : > { %555 = dma.done.wait (%p814_p8), %s151_s29, 512  }
  0x54   : > { %557 = vsyncadd (%p814_p8), %s151_s29, 4294966784  ;;  %v583_v0 = vmov 0   ;;  %v442_v1 = vld [vmem:[%s154_s8 + $0x4] ss:$8 sps:$4 sm:$0xff]   ;;  %v444_v2 = vld [vmem:[%s154_s8] ss:$8 sps:$4 sm:$0xff]  }
  0x55   : > { %239 = vmatprep.mubr.bf16.mxu0 %v583_v0  ;;  %207 = vmatprep.subr.bf16.mxu0 %v442_v1  ;;  %v445_v3 = vld [vmem:[%s154_s8 + $0x14] ss:$8 sps:$4 sm:$0xff]   ;;  %v447_v4 = vld [vmem:[%s154_s8 + $0x10] ss:$8 sps:$4 sm:$0xff]   ;;  %vm203_vm0 = vcmask 261120   ;;  %s367_s23 = sshll.u32 %s739_s7, 2 }
  0x56   : > { %208 = vmatpush1.bf16.msra.mxu0 %v444_v2  ;;  %v178_v5 = vld [vmem:[#allocation2] sm:$0x1]  ;;  %s380_s20 = sshll.u32 %s621_s13, 6  ;;  %s174_s28 = scalar_lea.vmem [#allocation7], %s367_s23 }
  0x57   : > { %209 = vmatprep.subr.bf16.mxu0 %v445_v3  ;;  %s275_s3 = sshll.u32 %s174_s28, 4  ;;  %s752_s14 = scalar_lea.hbm %s797_s2, %s380_s20  ;;  %s754_s3 = int_to_ptr.vmem [resolvable:$true] %s275_s3 }
  0x58   : > { %s261_s16 = scalar_lea.sflag [#allocation4], %s739_s7  ;;  %s506_s13 = scalar_lea.vmem %s754_s3, 64 }
  0x59   : > { %p507_p6 = scmp.ne.s32.totalorder %s754_s3, %s506_s13  ;;  %p815_p9 = scmp.ne.s32.totalorder %s805_s21, 0 }
  0x5a   : > { %210 = vmatpush1.bf16.msra.mxu0 %v447_v4  ;;  %s584_s27 = smov [#allocation7]  }
  0x5b   : > { %p508_p10 = pnand %p507_p6, %p815_p9  ;;  %s510_s17 = sshll.u32 %s584_s27, 4  ;;  %s511_s17 = int_to_ptr.vmem [resolvable:$false] %s510_s17 }
  0x5c   : > { %s512_s19 = scalar_lea.vmem %s511_s17, 128  ;;  %p513_p1 = scmp.lt.s32.totalorder %s754_s3, %s511_s17 }
  0x5d   : > { %372 = vmatmul.mubr.msk.bf16.vlgmr.msra.gmra.mrb[0].mxu0 %vm203_vm0, %v178_v5  ;;  %p509_p5 = pneg %p508_p10  ;;  %p514_p2 = scmp.lt.s32.totalorder %s512_s19, %s506_s13 }
  0x5f   : > { %p515_p4 = por %p514_p2, %p513_p1 }
  0x61   : > { %p516_p12 = pnand %p515_p4, %p509_p5 }
 0x130   : > { %v241_v6 = vpop.f32.mrb[0].mxu0 }
 0x131   : > { %v243_v7 = vpop.f32.mrb[1].mxu0 }
 0x132   : > { %v250_v8 = vcombine.low %v241_v6, %v243_v7  ;;  %v245_v9 = vpop.f32.mrb[2].mxu0 }
 0x133   : > { %v246_v10 = vpop.f32.mrb[3].mxu0 }
 0x134   : > { %373 = vst.sshfl [vmem:[%s174_s28] sm:$0x33 pattern:$0x76325410] %v250_v8 }
 0x135   : > { %519 = shalt.err (!%p516_p12)
}
 0x136   : > { %s520_s24 = scalar_lea.hbm %s752_s14, 64  ;;  %s524_s5 = scalar_lea.hbm %s797_s2, 256 }
 0x137   : > { %p521_p0 = scmp.ne.s32.totalorder %s752_s14, %s520_s24  ;;  %p525_p13 = scmp.lt.u32.totalorder %s752_s14, %s797_s2 }
 0x138   : > { %p526_p7 = scmp.lt.u32.totalorder %s524_s5, %s520_s24  ;;  %p528_p6 = scmp.lt.u32.totalorder %s520_s24, %s752_s14 }
 0x139   : > { %p522_p3 = pnand %p521_p0, %p815_p9 }
 0x13a   : > { %p527_p8 = por %p526_p7, %p525_p13 }
 0x13b   : > { %p523_p11 = pneg %p522_p3 }
 0x13c   : > { %p529_p10 = por %p528_p6, %p527_p8 }
 0x13e   : > { %p530_p5 = pnand %p529_p10, %p523_p11 }
 0x140   : > { %533 = shalt.err (!%p530_p5)
}
 0x141   : > { %387 = dma.vmem_to_hbm [thread:$0]  (%p815_p9), %s754_s3, 64, %s752_s14, %s261_s16  }
 0x142 PF: > { %p404_p1 = scmp.ge.s32.totalorder %s576_s12, 2  ;;  %s287_s29 = sand.u32 1, %s564_s9  }
 0x143   : > { %p816_p2 = scmp.ne.s32.totalorder %s806_s22, 0  ;;  %s288_s8 = scalar_lea.sflag [#allocation4], %s287_s29 }
 0x145   : > { %p398_p4 = pnand %p404_p1, %p816_p2 }
 0x147   : > { %559 = dma.done.wait (!%p398_p4), %s288_s8, 64  }
 0x148   : > { %561 = vsyncadd (!%p398_p4), %s288_s8, 4294967232  ;;  %p16_p12 = scmp.ge.s32.totalorder %s625_s15, 6   ;;  %s817_s9 = smov %s568_s10 }
 0x149   : > { %s818_s10 = smov %s572_s11  ;;  %s819_s11 = smov %s637_s18 }
 0x14a   : > { %s820_s12 = smov %s625_s15  ;;  %18 = sbr.rel (!%p16_p12) target bundleno = 6 (0x6), region = 78 }
 0x151   :  { %293 = vsyncpa [#allocation3], 1 }
 0x152   :  { %295 = vsyncpa [#allocation3 + $0x1], 1 }
 0x153   :  { %296 = vsyncpa [#allocation6], 1 }
 0x154   :  { %298 = vsyncpa [#allocation6 + $0x1], 1 }
 0x155   :  { %299 = vsyncpa [#allocation4], 1 }
 0x156   :  { %301 = vsyncpa [#allocation4 + $0x1], 1 }

</bundles_post_ra>
